<compile_context>
chip_gen: v6e
topology: v6e:2x2x1
jax: 0.10.0
libtpu: 0.0.40
codegen_flags: <defaults>
</compile_context>

<pallas_src>
import jax
import jax.numpy as jnp
from jax.experimental import pallas as pl
from jax.experimental.pallas import tpu as pltpu


def _round_up(x: int, m: int) -> int:
    return ((x + m - 1) // m) * m


def _tpu_generation_plan():
    """Per-generation tile targets + physical VMEM (bytes per TensorCore)."""
    kind = ""
    try:
        kind = jax.devices()[0].device_kind.lower()
    except Exception:
        pass
    if "v7" in kind:
        # v7x: 64 MiB VMEM/TC, 3.2 TB/s HBM -> ridge ~311 fl/B; 512-class tiles.
        return dict(tm=512, tn=512, tk=512, vmem_phys=64 * 1024 * 1024)
    if "v6" in kind:
        # v6e: 128 MiB VMEM, ridge ~656 fl/B -> larger tiles (multiples of 256).
        return dict(tm=768, tn=768, tk=512, vmem_phys=128 * 1024 * 1024)
    # v5e / default: ridge ~240 fl/B; 512-class, 128-multiples are enough.
    return dict(tm=512, tn=512, tk=512, vmem_phys=128 * 1024 * 1024)


def _pad2d(a, rows, cols, dtype):
    """Cast + zero-pad a 2-D array only when actually required."""
    if a.dtype != dtype:
        a = a.astype(dtype)
    r, c = a.shape
    if r == rows and c == cols:
        return a
    return jnp.pad(a, ((0, rows - r), (0, cols - c)))


# ------------------------------------------------------------------- kernels

def _make_fc_direct_kernel(relu_max_clip: float):
    """Single-shot tile: full K reduction in one jnp.dot, fused epilogue."""
    def kernel(x_ref, w_ref, b_ref, o_ref):
        y = jnp.dot(x_ref[...], w_ref[...], preferred_element_type=jnp.float32)
        y = y + b_ref[...]                               # (1, tn) broadcast over rows
        y = jnp.minimum(jnp.maximum(y, 0.0), relu_max_clip)
        o_ref[...] = y.astype(o_ref.dtype)
    return kernel


def _make_fc_acc_kernel(relu_max_clip: float):
    """K-tiled reduction with a resident f32 VMEM accumulator."""
    def kernel(x_ref, w_ref, b_ref, o_ref, acc_ref):
        k = pl.program_id(2)

        @pl.when(k == 0)
        def _():
            acc_ref[...] = jnp.zeros_like(acc_ref)

        acc_ref[...] += jnp.dot(
            x_ref[...], w_ref[...], preferred_element_type=jnp.float32)

        @pl.when(k == pl.num_programs(2) - 1)
        def _():
            y = acc_ref[...] + b_ref[...]
            y = jnp.minimum(jnp.maximum(y, 0.0), relu_max_clip)
            o_ref[...] = y.astype(o_ref.dtype)
    return kernel


# ---------------------------------------------------------- parameter prep

def prepare_fc_params(weight, bias, compute_dtype=jnp.bfloat16,
                      force_tiled=False, tile_overrides=None):
    """Hoisted, one-time parameter prep: pad to lane-dense shapes + cast to bf16.

    weight: (n_feature, n_hidden); bias: (n_hidden,).
    Returns a dict consumed by `fully_connected_prepared`.
    """
    overrides = dict(tile_overrides or {})
    n_feature, n_hidden = weight.shape
    plan = _tpu_generation_plan()
    in_bytes = jnp.dtype(compute_dtype).itemsize

    f128 = _round_up(n_feature, 128)
    h128 = _round_up(n_hidden, 128)

    # Weight-resident specialization: double-buffered weight fits a VMEM budget
    # (16 MiB on v7x, 32 MiB on v5e/v6e) -> weight is DMA'd exactly once.
    resident_budget = plan["vmem_phys"] // 4
    weight_resident = (not force_tiled) and (2 * f128 * h128 * in_bytes <= resident_budget)

    if weight_resident:
        tk, tn = f128, h128
        f_p, h_p = f128, h128
    else:
        tk = int(overrides.get("tk", min(plan["tk"], f128)))
        tn = int(overrides.get("tn", min(plan["tn"], h128)))
        f_p = _round_up(n_feature, tk)
        h_p = _round_up(n_hidden, tn)

    w_p = _pad2d(weight, f_p, h_p, compute_dtype)
    b2d = bias.astype(jnp.float32).reshape(1, n_hidden)
    b_p = b2d if h_p == n_hidden else jnp.pad(b2d, ((0, 0), (0, h_p - n_hidden)))

    return dict(w=w_p, b=b_p, n_feature=n_feature, n_hidden=n_hidden,
                f_p=f_p, h_p=h_p, tk=tk, tn=tn,
                weight_resident=weight_resident,
                tm_target=int(overrides.get("tm", plan["tm"])),
                vmem_phys=plan["vmem_phys"], compute_dtype=compute_dtype)


# ------------------------------------------------------------------- forward

def fully_connected_prepared(x, params, relu_max_clip=20.0, dropout=0.0,
                             out_dtype=None):
    """FullyConnected forward with pre-prepared (padded / cast) parameters."""
    n_feature, n_hidden = params["n_feature"], params["n_hidden"]
    f_p, h_p = params["f_p"], params["h_p"]
    tk, tn = params["tk"], params["tn"]
    compute_dtype = params["compute_dtype"]
    weight_resident = params["weight_resident"]
    out_dtype = out_dtype if out_dtype is not None else x.dtype

    in_bytes = jnp.dtype(compute_dtype).itemsize
    out_bytes = jnp.dtype(out_dtype).itemsize

    orig_shape = x.shape
    assert orig_shape[-1] == n_feature
    x2d = x.reshape(-1, n_feature)
    m = x2d.shape[0]

    k_tiles = f_p // tk

    # --- choose tm (rows per grid step) and size VMEM from the real footprint.
    vmem_budget = (params["vmem_phys"] * 3) // 5        # headroom for compiler scratch
    tm = min(params["tm_target"], _round_up(m, 8))
    tm = _round_up(tm, 8)

    def footprint(tm_):
        buf = 2 * tm_ * tk * in_bytes                   # x tile, double-buffered
        buf += 2 * tk * tn * in_bytes                   # weight tile
        buf += 2 * tm_ * tn * out_bytes                 # output tile
        buf += 2 * 1 * tn * 4                           # bias (f32)
        if (not weight_resident) and k_tiles > 1:
            buf += tm_ * tn * 4                         # f32 accumulator scratch
        return buf

    while tm > 8 and footprint(tm) > vmem_budget:
        tm = max(8, _round_up(tm // 2, 8))

    m_p = _round_up(m, tm)
    x_p = _pad2d(x2d, m_p, f_p, compute_dtype)

    vmem_limit = int(footprint(tm) * 1.3) + (2 << 20)
    vmem_limit = max(vmem_limit, 16 * 1024 * 1024)
    vmem_limit = min(vmem_limit, (params["vmem_phys"] * 3) // 4)

    relu_clip = float(relu_max_clip)
    m_tiles = m_p // tm
    n_tiles = h_p // tn

    if weight_resident:
        # Weight held resident across the whole 1-D M grid: x streams once,
        # weight is DMA'd once, output is written once.  Fused epilogue.
        grid = (m_tiles,)
        in_specs = [
            pl.BlockSpec((tm, f_p), lambda i: (i, 0)),      # x
            pl.BlockSpec((f_p, h_p), lambda i: (0, 0)),     # weight (resident)
            pl.BlockSpec((1, h_p), lambda i: (0, 0)),       # bias (resident)
        ]
        out_specs = pl.BlockSpec((tm, h_p), lambda i: (i, 0))
        semantics = ("parallel",)
        kernel = _make_fc_direct_kernel(relu_clip)
        scratch = []
        x_reads, w_reads = 1, 1
    elif k_tiles == 1:
        # Tiled over (N, M), full K per tile: no accumulator scratch needed.
        grid = (n_tiles, m_tiles)
        in_specs = [
            pl.BlockSpec((tm, tk), lambda j, i: (i, 0)),
            pl.BlockSpec((tk, tn), lambda j, i: (0, j)),    # stationary over i
            pl.BlockSpec((1, tn), lambda j, i: (0, j)),
        ]
        out_specs = pl.BlockSpec((tm, tn), lambda j, i: (i, j))
        semantics = ("parallel", "parallel")
        kernel = _make_fc_direct_kernel(relu_clip)
        scratch = []
        x_reads, w_reads = n_tiles, 1
    else:
        # General (N, M, K) grid, K innermost, f32 VMEM accumulator.
        grid = (n_tiles, m_tiles, k_tiles)
        in_specs = [
            pl.BlockSpec((tm, tk), lambda j, i, k: (i, k)),
            pl.BlockSpec((tk, tn), lambda j, i, k: (k, j)),
            pl.BlockSpec((1, tn), lambda j, i, k: (0, j)),
        ]
        out_specs = pl.BlockSpec((tm, tn), lambda j, i, k: (i, j))
        semantics = ("parallel", "parallel", "arbitrary")
        kernel = _make_fc_acc_kernel(relu_clip)
        scratch = [pltpu.VMEM((tm, tn), jnp.float32)]
        x_reads, w_reads = n_tiles, m_tiles

    cost = pl.CostEstimate(
        flops=2 * m_p * f_p * h_p,
        bytes_accessed=(x_reads * m_p * f_p * in_bytes      # x (incl. re-streaming)
                        + w_reads * f_p * h_p * in_bytes    # weight (incl. re-streaming)
                        + h_p * 4                           # bias
                        + m_p * h_p * out_bytes),           # output
        transcendentals=0)

    out_p = pl.pallas_call(
        kernel,
        out_shape=jax.ShapeDtypeStruct((m_p, h_p), out_dtype),
        grid_spec=pl.GridSpec(
            grid=grid,
            in_specs=in_specs,
            out_specs=out_specs,
            scratch_shapes=scratch,
        ),
        compiler_params=pltpu.CompilerParams(
            dimension_semantics=semantics,
            vmem_limit_bytes=vmem_limit),
        cost_estimate=cost,
    )(x_p, params["w"], params["b"])

    out2d = out_p[:m, :n_hidden]
    # TODO(synk): training-mode dropout (pltpu.prng_seed + prng_random_bits mask,
    # 1/(1-p) scaling) is omitted; dropout is identity in eval mode.
    return out2d.reshape(*orig_shape[:-1], n_hidden)


def fully_connected(x, weight, bias, relu_max_clip=20.0, dropout=0.0,
                    compute_dtype=jnp.bfloat16, out_dtype=None):
    """Convenience wrapper (prep + apply).  Hoist prepare_fc_params in real use."""
    params = prepare_fc_params(weight, bias, compute_dtype)
    return fully_connected_prepared(x, params, relu_max_clip, dropout, out_dtype)


if __name__ == "__main__":
    # Shapes consistent with the module: (batch, seq, n_feature) -> (batch, seq, n_hidden)
    batch, seq, n_feature, n_hidden = 2, 8, 32, 32
    relu_max_clip = 20.0
    dropout = 0.0  # eval mode / no dropout

    key = jax.random.PRNGKey(0)
    kx, kw, kb = jax.random.split(key, 3)
    x = jax.random.normal(kx, (batch, seq, n_feature), dtype=jnp.float32)
    # Deterministic synthetic parameters (not a checkpoint load).
    weight = jax.random.normal(kw, (n_feature, n_hidden), dtype=jnp.float32) * 0.1
    bias = jax.random.normal(kb, (n_hidden,), dtype=jnp.float32) * 0.1

    # Hoisted parameter prep: padding + bf16 cast happen once, not per call.
    params = prepare_fc_params(weight, bias)
    out = fully_connected_prepared(x, params, relu_max_clip, dropout)
    out = jax.block_until_ready(out)
    assert out.shape == (batch, seq, n_hidden)

    # Reference 1: same bf16-input / f32-accumulation recipe -> tight tolerance.
    ref_bf = jnp.einsum("bsf,fh->bsh", x.astype(jnp.bfloat16),
                        weight.astype(jnp.bfloat16),
                        preferred_element_type=jnp.float32) + bias
    ref_bf = jnp.clip(jnp.maximum(ref_bf, 0.0), 0.0, relu_max_clip)
    assert jnp.allclose(out, ref_bf.astype(out.dtype), atol=2e-3, rtol=2e-3)

    # Reference 2: full f32 math -> loose tolerance (bf16 input quantization).
    ref_f32 = jnp.clip(jnp.maximum(x @ weight + bias, 0.0), 0.0, relu_max_clip)
    assert jnp.allclose(out, ref_f32, atol=5e-2, rtol=5e-2)

    # Also exercise the general K-tiled (accumulator) path at a tiny size.
    m2, k2, h2 = 64, 256, 128
    x2 = jax.random.normal(jax.random.PRNGKey(1), (m2, k2), dtype=jnp.float32)
    w2 = jax.random.normal(jax.random.PRNGKey(2), (k2, h2), dtype=jnp.float32) * 0.05
    b2 = jax.random.normal(jax.random.PRNGKey(3), (h2,), dtype=jnp.float32) * 0.05
    params2 = prepare_fc_params(w2, b2, force_tiled=True,
                                tile_overrides=dict(tm=64, tn=128, tk=128))
    out2 = jax.block_until_ready(
        fully_connected_prepared(x2, params2, relu_max_clip, dropout))
    ref2 = jnp.dot(x2.astype(jnp.bfloat16), w2.astype(jnp.bfloat16),
                   preferred_element_type=jnp.float32) + b2
    ref2 = jnp.clip(jnp.maximum(ref2, 0.0), 0.0, relu_max_clip)
    assert out2.shape == (m2, h2)
    assert jnp.allclose(out2, ref2.astype(out2.dtype), atol=2e-3, rtol=2e-3)

    print("KERNEL_OK")
</pallas_src>

<mosaic_0001>
module attributes {stable_mosaic.version = 11 : i64} {
  func.func @kernel(%arg0: i32, %arg1: memref<16x128xbf16, #tpu.memory_space<vmem>>, %arg2: memref<128x128xbf16, #tpu.memory_space<vmem>>, %arg3: memref<1x128xf32, #tpu.memory_space<vmem>>, %arg4: memref<16x128xf32, #tpu.memory_space<vmem>>) attributes {dimension_semantics = [#tpu.dimension_semantics<parallel>], iteration_bounds = array<i64: 1>, scalar_prefetch = 0 : i64, scratch_operands = 0 : i64, tpu.core_type = #tpu.core_type<tc>, window_params = [{transform_indices = @transform_0, window_bounds = array<i64: 16, 128>}, {pipeline_mode = #tpu.pipeline_mode<synchronous>, transform_indices = @transform_1, window_bounds = array<i64: 128, 128>}, {pipeline_mode = #tpu.pipeline_mode<synchronous>, transform_indices = @transform_2, window_bounds = array<i64: 1, 128>}, {transform_indices = @transform_3, window_bounds = array<i64: 16, 128>}]} {
    %c0 = arith.constant 0 : index
    %c0_0 = arith.constant 0 : index
    %0 = vector.load %arg1[%c0, %c0_0] : memref<16x128xbf16, #tpu.memory_space<vmem>>, vector<16x128xbf16>
    %c0_1 = arith.constant 0 : index
    %c0_2 = arith.constant 0 : index
    %1 = vector.load %arg2[%c0_1, %c0_2] : memref<128x128xbf16, #tpu.memory_space<vmem>>, vector<128x128xbf16>
    %cst = arith.constant dense<0.000000e+00> : vector<16x128xf32>
    %2 = tpu.matmul %0, %1, %cst {dimension_numbers = #tpu.dot_dimension_numbers<[1], [0], [0], [1], [0, 0, 1, 1], [], []>} : vector<16x128xbf16>, vector<128x128xbf16>, vector<16x128xf32> -> vector<16x128xf32>
    %c0_3 = arith.constant 0 : index
    %c0_4 = arith.constant 0 : index
    %3 = vector.load %arg3[%c0_3, %c0_4] : memref<1x128xf32, #tpu.memory_space<vmem>>, vector<1x128xf32>
    %4 = vector.broadcast %3 : vector<1x128xf32> to vector<16x128xf32>
    %5 = arith.addf %2, %4 : vector<16x128xf32>
    %cst_5 = arith.constant 0.000000e+00 : f32
    %6 = vector.broadcast %cst_5 : f32 to vector<16x128xf32>
    %7 = arith.maximumf %5, %6 : vector<16x128xf32>
    %cst_6 = arith.constant 2.000000e+01 : f32
    %8 = vector.broadcast %cst_6 : f32 to vector<16x128xf32>
    %9 = arith.minimumf %7, %8 : vector<16x128xf32>
    %c0_7 = arith.constant 0 : index
    %c0_8 = arith.constant 0 : index
    %10 = vector.load %arg4[%c0_7, %c0_8] : memref<16x128xf32, #tpu.memory_space<vmem>>, vector<16x128xf32>
    tpu.vector_store %arg4[%c0_7, %c0_8], %9 {strides = array<i32>} : memref<16x128xf32, #tpu.memory_space<vmem>>, vector<16x128xf32>,
    return
  }
  func.func @transform_0(%arg0: i32) -> (i32, i32) {
    %c0_i32 = arith.constant 0 : i32
    %c0_i32_0 = arith.constant 0 : i32
    return %arg0, %c0_i32 : i32, i32
  }
  func.func @transform_1(%arg0: i32) -> (i32, i32) {
    %c0_i32 = arith.constant 0 : i32
    %c0_i32_0 = arith.constant 0 : i32
    %c0_i32_1 = arith.constant 0 : i32
    return %c0_i32, %c0_i32_0 : i32, i32
  }
  func.func @transform_2(%arg0: i32) -> (i32, i32) {
    %c0_i32 = arith.constant 0 : i32
    %c0_i32_0 = arith.constant 0 : i32
    %c0_i32_1 = arith.constant 0 : i32
    return %c0_i32, %c0_i32_0 : i32, i32
  }
  func.func @transform_3(%arg0: i32) -> (i32, i32) {
    %c0_i32 = arith.constant 0 : i32
    %c0_i32_0 = arith.constant 0 : i32
    return %arg0, %c0_i32 : i32, i32
  }
}

</mosaic_0001>

<bundles_post_ra>
// kernel: tpu_custom_call.1
= control target key start
LH: loop header
LB: loop body
LE: loop exit
PB: predicated region body
PF: predicated region fallthrough
CT: control target
= control target key end

     0   :  { %8 = vsyncpa [#allocation3], 0  ;;  %s352_s0 = inlined_call_operand.hbm [shape: bf16[16,128], index: 0, kind: input, shape index: {}]   ;;  %s353_s1 = inlined_call_operand.hbm [shape: bf16[128,128], index: 1, kind: input, shape index: {}]   ;;  %s354_s2 = inlined_call_operand.vmem [shape: f32[1,128], index: 2, kind: input, shape index: {}]   ;;  %s355_s3 = inlined_call_operand.hbm [shape: f32[16,128], index: 3, kind: output, shape index: {}]  }
   0x1   :  { %9 = vsyncpa [#allocation6], 0 }
   0x2   :  { %10 = vsyncpa [#allocation4], 0  ;;  %s311_s12 = smov [#allocation2]  }
   0x3   :  { %s16_s13 = sshll.u32 %s311_s12, 4  ;;  %s17_s13 = int_to_ptr.vmem [resolvable:$true] %s16_s13 }
   0x4   :  { %s253_s14 = scalar_lea.vmem %s17_s13, 128  ;;  %p258_p1 = scmp.lt.s32.totalorder %s17_s13, %s17_s13 }
   0x5   :  { %p254_p0 = scmp.ne.s32.totalorder %s17_s13, %s253_s14  ;;  %p259_p2 = scmp.lt.s32.totalorder %s253_s14, %s253_s14 }
   0x7   :  { %p260_p3 = por %p259_p2, %p258_p1 }
   0x9   :  { %p261_p4 = pnand %p260_p3, %p254_p0 }
   0xb   :  { %264 = shalt.err (!%p261_p4)
}
   0xc   :  { %s312_s15 = smov 64   ;;  %s313_s16 = smov 4  }
   0xd   :  { %22 = dma.hbm_to_vmem [thread:$0]  %s352_s0, 128, %s17_s13, [#allocation3], %s312_s15, %s312_s15, %s313_s16  }
   0xe   :  { %s314_s19 = smov [#allocation5]  }
   0xf   :  { %s28_s20 = sshll.u32 %s314_s19, 4  ;;  %s29_s20 = int_to_ptr.vmem [resolvable:$true] %s28_s20 }
  0x10   :  { %s273_s21 = scalar_lea.vmem %s29_s20, 1024  ;;  %p278_p6 = scmp.lt.s32.totalorder %s29_s20, %s29_s20 }
  0x11   :  { %p274_p5 = scmp.ne.s32.totalorder %s29_s20, %s273_s21  ;;  %p279_p7 = scmp.lt.s32.totalorder %s273_s21, %s273_s21 }
  0x13   :  { %p280_p8 = por %p279_p7, %p278_p6 }
  0x15   :  { %p281_p9 = pnand %p280_p8, %p274_p5 }
  0x17   :  { %284 = shalt.err (!%p281_p9)
}
  0x18   :  { %34 = dma.hbm_to_vmem [thread:$0]  %s353_s1, 1024, %s29_s20, [#allocation6], %s312_s15, %s312_s15, %s313_s16  }
  0x19   :  { %305 = dma.done.wait [#allocation3], 128  }
  0x1a   :  { %306 = vsyncadd [#allocation3], 4294967168 }
  0x1b   :  { %307 = dma.done.wait [#allocation6], 1024  }
  0x1c   :  { %308 = vsyncadd [#allocation6], 4294966272  ;;  %v315_v0 = vmov 0.0   ;;  %vm316_vm0 = vmmov 0   ;;  %v236_v1 = vld [vmem:[#allocation5 + $0x38] sm:$0xff]   ;;  %v237_v2 = vld [vmem:[#allocation5 + $0x30] sm:$0xff]  }
  0x1d   :  { %207 = vmatprep.subr.bf16.mxu0 %v315_v0  ;;  %223 = vmatprep.mubr.msk.bf16.mxu0 %vm316_vm0, %v315_v0  ;;  %v238_v3 = vld [vmem:[#allocation5 + $0x28] sm:$0xff]   ;;  %v239_v4 = vld [vmem:[#allocation5 + $0x20] sm:$0xff]   ;;  %v240_v5 = vld [vmem:[#allocation5 + $0x18] sm:$0xff]   ;;  %s317_s24 = smov [#allocation7]  }
  0x1e   :  { %208 = vmatpush3.bf16.msra.mxu0 %v236_v1  ;;  %v241_v6 = vld [vmem:[#allocation5 + $0x10] sm:$0xff]   ;;  %v242_v7 = vld [vmem:[#allocation5 + $0x8] sm:$0xff]   ;;  %v243_v8 = vld [vmem:[#allocation5] sm:$0xff]   ;;  %s175_s25 = sshll.u32 %s317_s24, 4  ;;  %s176_s25 = int_to_ptr.vmem [resolvable:$true] %s175_s25 }
  0x1f   :  { %209 = vmatprep.subr.bf16.mxu0 %v315_v0  ;;  %v244_v9 = vld [vmem:[#allocation2] sm:$0xff]   ;;  %s285_s26 = scalar_lea.vmem %s176_s25, 256  ;;  %p290_p11 = scmp.lt.s32.totalorder %s176_s25, %s176_s25 }
  0x20   :  { %v188_v10 = vld [vmem:[%s354_s2] ss:$0 sm:$0xff]  ;;  %p286_p10 = scmp.ne.s32.totalorder %s176_s25, %s285_s26  ;;  %p291_p12 = scmp.lt.s32.totalorder %s285_s26, %s285_s26 }
  0x22   :  { %210 = vmatpush3.bf16.msra.mxu0 %v237_v2  ;;  %p292_p13 = por %p291_p12, %p290_p11 }
  0x23   :  { %211 = vmatprep.subr.bf16.mxu0 %v315_v0 }
  0x24   :  { %p293_p0 = pnand %p292_p13, %p286_p10 }
  0x26   :  { %212 = vmatpush3.bf16.msra.mxu0 %v238_v3 }
  0x27   :  { %213 = vmatprep.subr.bf16.mxu0 %v315_v0 }
  0x2a   :  { %214 = vmatpush3.bf16.msra.mxu0 %v239_v4 }
  0x2b   :  { %215 = vmatprep.subr.bf16.mxu0 %v315_v0 }
  0x2e   :  { %216 = vmatpush3.bf16.msra.mxu0 %v240_v5 }
  0x2f   :  { %217 = vmatprep.subr.bf16.mxu0 %v315_v0 }
  0x32   :  { %218 = vmatpush3.bf16.msra.mxu0 %v241_v6 }
  0x33   :  { %219 = vmatprep.subr.bf16.mxu0 %v315_v0 }
  0x36   :  { %220 = vmatpush3.bf16.msra.mxu0 %v242_v7 }
  0x37   :  { %221 = vmatprep.subr.bf16.mxu0 %v315_v0 }
  0x3a   :  { %222 = vmatpush3.bf16.msra.mxu0 %v243_v8 }
  0x3d   :  { %224 = vmatmul.mubr.bf16.vlgmr.msra.gmra.mxu0 %v244_v9 }
  0xfd   :  { %v157_v11 = vpop.f32.mrf.mxu0 }
  0xfe   :  { %v158_v12 = vadd.f32 %v188_v10, %v157_v11 }
  0xff   :  { %v225_v13 = vpop.f32.mrf.mxu0 }
 0x100   :  { %v164_v14 = vmax.f32 %v158_v12, 0.0 }
 0x101   :  { %v160_v15 = vpop.f32.mrf.mxu0 }
 0x102   :  { %v166_v16 = vmin.f32 %v164_v14, 20.0  ;;  %v161_v17 = vadd.f32 %v188_v10, %v160_v15 }
 0x103   :  { %v226_v18 = vpop.f32.mrf.mxu0 }
 0x104   :  { %168 = vst [vmem:[#allocation7] sm:$0xff] %v166_v16  ;;  %v165_v19 = vmax.f32 %v161_v17, 0.0 }
 0x106   :  { %v167_v20 = vmin.f32 %v165_v19, 20.0 }
 0x108   :  { %169 = vst [vmem:[#allocation7 + $0x8] sm:$0xff] %v167_v20 }
 0x109   :  { %296 = shalt.err (!%p293_p0)
}
 0x10a   :  { %s318_s2 = smov 128   ;;  %s319_s27 = smov 8  }
 0x10b   :  { %181 = dma.vmem_to_hbm [thread:$0]  %s176_s25, 256, %s355_s3, [#allocation4], %s318_s2, %s318_s2, %s319_s27  }
 0x10c   :  { %309 = dma.done.wait [#allocation4], 256  }
 0x10d   :  { %310 = vsyncadd [#allocation4], 4294967040 }
 0x10e   :  { %185 = vsyncpa [#allocation3], 1 }
 0x10f   :  { %186 = vsyncpa [#allocation6], 1 }
 0x110   :  { %187 = vsyncpa [#allocation4], 1 }

</bundles_post_ra>
